<compile_context>
chip_gen: v7x
topology: tpu7x:2x2x1
jax: 0.10.0
libtpu: 0.0.40
codegen_flags: <defaults>
</compile_context>

<pallas_src>
import functools

import jax
import jax.numpy as jnp
from jax.experimental import pallas as pl
from jax.experimental.pallas import tpu as pltpu


def autoencoder_kernel(x_ref, wd_ref, bd_ref, wu_ref, bu_ref, out_ref):
    """Fused: out = relu(x @ Wd + bd) @ Wu + bu for one row-tile of x."""
    x = x_ref[...]                                              # (tm, D)
    # down projection + ReLU (MXU matmul, f32 accumulate)
    down = jnp.dot(x, wd_ref[...], preferred_element_type=jnp.float32)
    down = jnp.maximum(down + bd_ref[...], 0.0)                 # (tm, H) f32
    # up projection (cast accumulator to weight dtype so MXU operands match)
    up = jnp.dot(down.astype(wu_ref.dtype), wu_ref[...],
                 preferred_element_type=jnp.float32)            # (tm, D) f32
    out_ref[...] = (up + bu_ref[...]).astype(out_ref.dtype)


def _round_up(x, m):
    return ((x + m - 1) // m) * m


def _choose_row_tile(M):
    """Row tile: 16-row granularity (f32 & bf16 sublane-safe).

    - M <= 1024: one grid step covering everything (no per-step overhead).
    - Larger M: aim for >= 8 grid steps with tiles in [256, 1024] so both
      v7x TensorCores get several steps each and DMA/compute overlap; tm is
      capped at 1024 (3 MiB f32 tile) to stay far below v7x's 64 MiB VMEM.
    """
    if M <= 1024:
        return _round_up(max(M, 8), 16)
    return max(256, min(1024, _round_up(pl.cdiv(M, 8), 256)))


@functools.partial(jax.jit, static_argnames=("tm", "compute_dtype"))
def _autoencoder_forward_impl(x, w_down, b_down, w_up, b_up, *, tm, compute_dtype):
    orig_shape = x.shape
    input_dim = x.shape[-1]
    hidden_dim = w_down.shape[-1]

    x2d = x.reshape(-1, input_dim).astype(compute_dtype)
    M = x2d.shape[0]
    grid_steps = pl.cdiv(M, tm)

    # Matched MXU operand dtypes; biases as (1, N) so they broadcast in-kernel.
    wd = w_down.astype(compute_dtype)
    wu = w_up.astype(compute_dtype)
    bd = b_down.reshape(1, hidden_dim).astype(compute_dtype)
    bu = b_up.reshape(1, input_dim).astype(compute_dtype)

    # Deeper buffering on the streamed input only once there is something to
    # overlap (>= 3 grid steps).  Output / weights keep the default depth.
    if grid_steps >= 3:
        x_spec = pl.BlockSpec((tm, input_dim), lambda i: (i, 0),
                              pipeline_mode=pl.Buffered(3))
    else:
        x_spec = pl.BlockSpec((tm, input_dim), lambda i: (i, 0))

    out2d = pl.pallas_call(
        autoencoder_kernel,
        out_shape=jax.ShapeDtypeStruct((M, input_dim), compute_dtype),
        grid_spec=pltpu.PrefetchScalarGridSpec(
            num_scalar_prefetch=0,
            grid=(grid_steps,),
            in_specs=[
                x_spec,                                                   # x tile
                pl.BlockSpec((input_dim, hidden_dim), lambda i: (0, 0)),  # W_down
                pl.BlockSpec((1, hidden_dim), lambda i: (0, 0)),          # b_down
                pl.BlockSpec((hidden_dim, input_dim), lambda i: (0, 0)),  # W_up
                pl.BlockSpec((1, input_dim), lambda i: (0, 0)),           # b_up
            ],
            out_specs=pl.BlockSpec((tm, input_dim), lambda i: (i, 0)),
        ),
        compiler_params=pltpu.CompilerParams(
            dimension_semantics=("parallel",),
            vmem_limit_bytes=48 * 1024 * 1024,
        ),
    )(x2d, wd, bd, wu, bu)

    return out2d.reshape(orig_shape)


def autoencoder_forward(x, w_down, b_down, w_up, b_up, *, tm=None,
                        compute_dtype=None):
    """x: (..., input_dim) -> (..., input_dim), matching AutoEncoder.forward.

    compute_dtype=jnp.bfloat16 casts activations AND weights to bf16 for ~2x
    on this HBM-bound kernel (f32 accumulation is kept inside the kernel).
    """
    input_dim = x.shape[-1]
    M = 1
    for d in x.shape[:-1]:
        M *= d
    if tm is None:
        tm = _choose_row_tile(M)
    if compute_dtype is None:
        compute_dtype = x.dtype
    return _autoencoder_forward_impl(
        x, w_down, b_down, w_up, b_up,
        tm=int(tm), compute_dtype=jnp.dtype(compute_dtype))


def init_autoencoder_params(key, input_dim=768, output_dim=48, dtype=jnp.float32):
    """Mirror init_bert_weights: weights ~ N(0, 0.02), biases zero."""
    k_down, k_up = jax.random.split(key)
    w_down = (0.02 * jax.random.normal(k_down, (input_dim, output_dim))).astype(dtype)
    b_down = jnp.zeros((output_dim,), dtype)
    w_up = (0.02 * jax.random.normal(k_up, (output_dim, input_dim))).astype(dtype)
    b_up = jnp.zeros((input_dim,), dtype)
    return w_down, b_down, w_up, b_up


def _reference(x, w_down, b_down, w_up, b_up):
    return jnp.maximum(x @ w_down + b_down, 0.0) @ w_up + b_up


if __name__ == "__main__":
    input_dim, output_dim = 768, 48       # module defaults
    batch, seq = 2, 8                     # small leading dims (M = 16)

    key = jax.random.PRNGKey(0)
    k_x, k_p, k_x2 = jax.random.split(key, 3)
    x = jax.random.normal(k_x, (batch, seq, input_dim), jnp.float32)
    w_down, b_down, w_up, b_up = init_autoencoder_params(k_p, input_dim, output_dim)

    # f32 path
    out = jax.block_until_ready(autoencoder_forward(x, w_down, b_down, w_up, b_up))
    ref = _reference(x, w_down, b_down, w_up, b_up)
    assert out.shape == x.shape and out.dtype == x.dtype
    assert jnp.allclose(out, ref, atol=1e-4, rtol=1e-4)

    # Ragged row count (M = 15): exercises the masked partial last block that
    # replaced the old wrapper-side jnp.pad / slice.
    x_odd = jax.random.normal(k_x2, (3, 5, input_dim), jnp.float32)
    out_odd = jax.block_until_ready(
        autoencoder_forward(x_odd, w_down, b_down, w_up, b_up))
    ref_odd = _reference(x_odd, w_down, b_down, w_up, b_up)
    assert out_odd.shape == x_odd.shape
    assert jnp.allclose(out_odd, ref_odd, atol=1e-4, rtol=1e-4)

    # bf16 compute path (halves HBM bytes/row on this memory-bound kernel).
    out_bf16 = jax.block_until_ready(
        autoencoder_forward(x, w_down, b_down, w_up, b_up,
                            compute_dtype=jnp.bfloat16))
    assert out_bf16.shape == x.shape and out_bf16.dtype == jnp.bfloat16
    assert jnp.allclose(out_bf16.astype(jnp.float32), ref, atol=5e-2, rtol=5e-2)

    print("KERNEL_OK")
</pallas_src>

<mosaic_0001>
module attributes {stable_mosaic.version = 11 : i64} {
  func.func @autoencoder_kernel(%arg0: i32, %arg1: memref<16x768xf32, #tpu.memory_space<vmem>>, %arg2: memref<768x48xf32, #tpu.memory_space<vmem>>, %arg3: memref<1x48xf32, #tpu.memory_space<vmem>>, %arg4: memref<48x768xf32, #tpu.memory_space<vmem>>, %arg5: memref<1x768xf32, #tpu.memory_space<vmem>>, %arg6: memref<16x768xf32, #tpu.memory_space<vmem>>) attributes {dimension_semantics = [#tpu.dimension_semantics<parallel>], iteration_bounds = array<i64: 1>, scalar_prefetch = 0 : i64, scratch_operands = 0 : i64, tpu.core_type = #tpu.core_type<tc>, window_params = [{transform_indices = @transform_0, window_bounds = array<i64: 16, 768>}, {pipeline_mode = #tpu.pipeline_mode<synchronous>, transform_indices = @transform_1, window_bounds = array<i64: 768, 48>}, {pipeline_mode = #tpu.pipeline_mode<synchronous>, transform_indices = @transform_2, window_bounds = array<i64: 1, 48>}, {pipeline_mode = #tpu.pipeline_mode<synchronous>, transform_indices = @transform_3, window_bounds = array<i64: 48, 768>}, {pipeline_mode = #tpu.pipeline_mode<synchronous>, transform_indices = @transform_4, window_bounds = array<i64: 1, 768>}, {transform_indices = @transform_5, window_bounds = array<i64: 16, 768>}]} {
    %c0 = arith.constant 0 : index
    %c0_0 = arith.constant 0 : index
    %0 = vector.load %arg1[%c0, %c0_0] : memref<16x768xf32, #tpu.memory_space<vmem>>, vector<16x768xf32>
    %c0_1 = arith.constant 0 : index
    %c0_2 = arith.constant 0 : index
    %1 = vector.load %arg2[%c0_1, %c0_2] : memref<768x48xf32, #tpu.memory_space<vmem>>, vector<768x48xf32>
    %cst = arith.constant dense<0.000000e+00> : vector<16x48xf32>
    %2 = tpu.matmul %0, %1, %cst {dimension_numbers = #tpu.dot_dimension_numbers<[1], [0], [0], [1], [0, 0, 1, 1], [], []>} : vector<16x768xf32>, vector<768x48xf32>, vector<16x48xf32> -> vector<16x48xf32>
    %c0_3 = arith.constant 0 : index
    %c0_4 = arith.constant 0 : index
    %3 = vector.load %arg3[%c0_3, %c0_4] : memref<1x48xf32, #tpu.memory_space<vmem>>, vector<1x48xf32>
    %4 = vector.broadcast %3 : vector<1x48xf32> to vector<16x48xf32>
    %5 = arith.addf %2, %4 : vector<16x48xf32>
    %cst_5 = arith.constant 0.000000e+00 : f32
    %6 = vector.broadcast %cst_5 : f32 to vector<16x48xf32>
    %7 = arith.maximumf %5, %6 : vector<16x48xf32>
    %c0_6 = arith.constant 0 : index
    %c0_7 = arith.constant 0 : index
    %8 = vector.load %arg4[%c0_6, %c0_7] : memref<48x768xf32, #tpu.memory_space<vmem>>, vector<48x768xf32>
    %cst_8 = arith.constant dense<0.000000e+00> : vector<16x768xf32>
    %9 = tpu.matmul %7, %8, %cst_8 {dimension_numbers = #tpu.dot_dimension_numbers<[1], [0], [0], [1], [0, 0, 1, 1], [], []>} : vector<16x48xf32>, vector<48x768xf32>, vector<16x768xf32> -> vector<16x768xf32>
    %c0_9 = arith.constant 0 : index
    %c0_10 = arith.constant 0 : index
    %10 = vector.load %arg5[%c0_9, %c0_10] : memref<1x768xf32, #tpu.memory_space<vmem>>, vector<1x768xf32>
    %11 = vector.broadcast %10 : vector<1x768xf32> to vector<16x768xf32>
    %12 = arith.addf %9, %11 : vector<16x768xf32>
    %c0_11 = arith.constant 0 : index
    %c0_12 = arith.constant 0 : index
    %13 = vector.load %arg6[%c0_11, %c0_12] : memref<16x768xf32, #tpu.memory_space<vmem>>, vector<16x768xf32>
    tpu.vector_store %arg6[%c0_11, %c0_12], %12 {strides = array<i32>} : memref<16x768xf32, #tpu.memory_space<vmem>>, vector<16x768xf32>,
    return
  }
  func.func @transform_0(%arg0: i32) -> (i32, i32) {
    %c0_i32 = arith.constant 0 : i32
    %c0_i32_0 = arith.constant 0 : i32
    return %arg0, %c0_i32 : i32, i32
  }
  func.func @transform_1(%arg0: i32) -> (i32, i32) {
    %c0_i32 = arith.constant 0 : i32
    %c0_i32_0 = arith.constant 0 : i32
    %c0_i32_1 = arith.constant 0 : i32
    return %c0_i32, %c0_i32_0 : i32, i32
  }
  func.func @transform_2(%arg0: i32) -> (i32, i32) {
    %c0_i32 = arith.constant 0 : i32
    %c0_i32_0 = arith.constant 0 : i32
    %c0_i32_1 = arith.constant 0 : i32
    return %c0_i32, %c0_i32_0 : i32, i32
  }
  func.func @transform_3(%arg0: i32) -> (i32, i32) {
    %c0_i32 = arith.constant 0 : i32
    %c0_i32_0 = arith.constant 0 : i32
    %c0_i32_1 = arith.constant 0 : i32
    return %c0_i32, %c0_i32_0 : i32, i32
  }
  func.func @transform_4(%arg0: i32) -> (i32, i32) {
    %c0_i32 = arith.constant 0 : i32
    %c0_i32_0 = arith.constant 0 : i32
    %c0_i32_1 = arith.constant 0 : i32
    return %c0_i32, %c0_i32_0 : i32, i32
  }
  func.func @transform_5(%arg0: i32) -> (i32, i32) {
    %c0_i32 = arith.constant 0 : i32
    %c0_i32_0 = arith.constant 0 : i32
    return %arg0, %c0_i32 : i32, i32
  }
}

</mosaic_0001>

<bundles_post_ra>
// kernel: _autoencoder_forward_impl.1
= control target key start
LH: loop header
LB: loop body
LE: loop exit
PB: predicated region body
PF: predicated region fallthrough
CT: control target
= control target key end

     0   :  { %s1474_s0 = inlined_call_operand.vmem [shape: f32[16,768], index: 0, kind: input, shape index: {}]   ;;  %s1475_s1 = inlined_call_operand.vmem [shape: f32[768,48], index: 1, kind: input, shape index: {}]   ;;  %s1476_s2 = inlined_call_operand.vmem [shape: f32[1,48], index: 2, kind: input, shape index: {}]   ;;  %s1477_s3 = inlined_call_operand.vmem [shape: f32[48,768], index: 3, kind: input, shape index: {}]   ;;  %s1478_s4 = inlined_call_operand.vmem [shape: f32[1,768], index: 4, kind: input, shape index: {}]   ;;  %s1479_s5 = inlined_call_operand.hbm [shape: f32[16,768], index: 5, kind: output, shape index: {}]  }
   0x1   :  { %v49_v0 = vld [vmem:[%s1475_s1 + $0x80] sm:$0xff]  ;;  %v50_v1 = vld [vmem:[%s1475_s1 + $0x88] sm:$0xff]  ;;  %v51_v11 = vld [vmem:[%s1475_s1 + $0x90] sm:$0xff] }
   0x2   :  { %v33_v2 = vld [vmem:[%s1475_s1] sm:$0xff]  ;;  %v818_v3 = vpack.c.bf16 %v50_v1, %v49_v0  ;;  %v34_v4 = vld [vmem:[%s1475_s1 + $0x8] sm:$0xff]  ;;  %v52_v13 = vld [vmem:[%s1475_s1 + $0x98] sm:$0xff] }
   0x3   :  { %v81_v5 = vld [vmem:[%s1475_s1 + $0x180] sm:$0xff]  ;;  %v82_v6 = vld [vmem:[%s1475_s1 + $0x188] sm:$0xff]  ;;  %v820_v7 = vpack.c.bf16 %v34_v4, %v33_v2  ;;  %v35_v14 = vld [vmem:[%s1475_s1 + $0x10] sm:$0xff]  ;;  %v822_v16 = vpack.c.bf16 %v52_v13, %v51_v11 }
   0x4   :  { %v850_v8 = vpack.c.bf16 %v82_v6, %v81_v5  ;;  %v65_v9 = vld [vmem:[%s1475_s1 + $0x100] sm:$0xff]  ;;  %v66_v10 = vld [vmem:[%s1475_s1 + $0x108] sm:$0xff]  ;;  %819 = vmatprep.subr.bf16.mxu0 %v818_v3  ;;  %v36_v15 = vld [vmem:[%s1475_s1 + $0x18] sm:$0xff] }
   0x5   :  { %v852_v12 = vpack.c.bf16 %v66_v10, %v65_v9  ;;  %821 = vmatpush3.bf16.msra.mxu0 %v820_v7  ;;  %v824_v17 = vpack.c.bf16 %v36_v15, %v35_v14  ;;  %v83_v18 = vld [vmem:[%s1475_s1 + $0x190] sm:$0xff]  ;;  %v84_v19 = vld [vmem:[%s1475_s1 + $0x198] sm:$0xff]  ;;  %v53_v23 = vld [vmem:[%s1475_s1 + $0xa0] sm:$0xff] }
   0x6   :  { %851 = vmatprep.subr.bf16.mxu1 %v850_v8  ;;  %v67_v20 = vld [vmem:[%s1475_s1 + $0x110] sm:$0xff]  ;;  %v854_v21 = vpack.c.bf16 %v84_v19, %v83_v18  ;;  %v68_v22 = vld [vmem:[%s1475_s1 + $0x118] sm:$0xff]  ;;  %v54_v24 = vld [vmem:[%s1475_s1 + $0xa8] sm:$0xff]  ;;  %823 = vmatprep.subr.bf16.mxu0 %v822_v16 }
   0x7   :  { %853 = vmatpush3.bf16.msra.mxu1 %v852_v12  ;;  %v856_v25 = vpack.c.bf16 %v68_v22, %v67_v20  ;;  %v826_v26 = vpack.c.bf16 %v54_v24, %v53_v23  ;;  %v37_v27 = vld [vmem:[%s1475_s1 + $0x20] sm:$0xff]  ;;  %v38_v28 = vld [vmem:[%s1475_s1 + $0x28] sm:$0xff]  ;;  %v55_v35 = vld [vmem:[%s1475_s1 + $0xb0] sm:$0xff] }
   0x8   :  { %v85_v29 = vld [vmem:[%s1475_s1 + $0x1a0] sm:$0xff]  ;;  %855 = vmatprep.subr.bf16.mxu1 %v854_v21  ;;  %v86_v30 = vld [vmem:[%s1475_s1 + $0x1a8] sm:$0xff]  ;;  %v828_v33 = vpack.c.bf16 %v38_v28, %v37_v27  ;;  %v56_v36 = vld [vmem:[%s1475_s1 + $0xb8] sm:$0xff] }
   0x9   :  { %v69_v31 = vld [vmem:[%s1475_s1 + $0x120] sm:$0xff]  ;;  %v70_v32 = vld [vmem:[%s1475_s1 + $0x128] sm:$0xff]  ;;  %825 = vmatpush3.bf16.msra.mxu0 %v824_v17  ;;  %v858_v34 = vpack.c.bf16 %v86_v30, %v85_v29  ;;  %v39_v37 = vld [vmem:[%s1475_s1 + $0x30] sm:$0xff]  ;;  %v830_v39 = vpack.c.bf16 %v56_v36, %v55_v35 }
   0xa   :  { %827 = vmatprep.subr.bf16.mxu0 %v826_v26  ;;  %v860_v38 = vpack.c.bf16 %v70_v32, %v69_v31  ;;  %v40_v40 = vld [vmem:[%s1475_s1 + $0x38] sm:$0xff]  ;;  %v87_v41 = vld [vmem:[%s1475_s1 + $0x1b0] sm:$0xff]  ;;  %v57_v46 = vld [vmem:[%s1475_s1 + $0xc0] sm:$0xff] }
   0xb   :  { %857 = vmatpush3.bf16.msra.mxu1 %v856_v25  ;;  %v88_v42 = vld [vmem:[%s1475_s1 + $0x1b8] sm:$0xff]  ;;  %v71_v44 = vld [vmem:[%s1475_s1 + $0x130] sm:$0xff]  ;;  %v58_v47 = vld [vmem:[%s1475_s1 + $0xc8] sm:$0xff]  ;;  %v832_v48 = vpack.c.bf16 %v40_v40, %v39_v37 }
   0xc   :  { %859 = vmatprep.subr.bf16.mxu1 %v858_v34  ;;  %v862_v43 = vpack.c.bf16 %v88_v42, %v87_v41  ;;  %v72_v45 = vld [vmem:[%s1475_s1 + $0x138] sm:$0xff]  ;;  %v89_v49 = vld [vmem:[%s1475_s1 + $0x1c0] sm:$0xff]  ;;  %v90_v50 = vld [vmem:[%s1475_s1 + $0x1c8] sm:$0xff]  ;;  %v834_v52 = vpack.c.bf16 %v58_v47, %v57_v46 }
   0xd   :  { %829 = vmatpush3.bf16.msra.mxu0 %v828_v33  ;;  %v864_v51 = vpack.c.bf16 %v72_v45, %v71_v44  ;;  %v41_v53 = vld [vmem:[%s1475_s1 + $0x40] sm:$0xff]  ;;  %v42_v54 = vld [vmem:[%s1475_s1 + $0x48] sm:$0xff]  ;;  %v866_v56 = vpack.c.bf16 %v90_v50, %v89_v49  ;;  %v59_v58 = vld [vmem:[%s1475_s1 + $0xd0] sm:$0xff] }
   0xe   :  { %831 = vmatprep.subr.bf16.mxu0 %v830_v39  ;;  %v73_v55 = vld [vmem:[%s1475_s1 + $0x140] sm:$0xff]  ;;  %v74_v57 = vld [vmem:[%s1475_s1 + $0x148] sm:$0xff]  ;;  %v60_v59 = vld [vmem:[%s1475_s1 + $0xd8] sm:$0xff]  ;;  %v836_v62 = vpack.c.bf16 %v42_v54, %v41_v53 }
   0xf   :  { %861 = vmatpush3.bf16.msra.mxu1 %v860_v38  ;;  %v91_v60 = vld [vmem:[%s1475_s1 + $0x1d0] sm:$0xff]  ;;  %v92_v61 = vld [vmem:[%s1475_s1 + $0x1d8] sm:$0xff]  ;;  %v868_v63 = vpack.c.bf16 %v74_v57, %v73_v55  ;;  %v838_v0 = vpack.c.bf16 %v60_v59, %v59_v58  ;;  %v61_v6 = vld [vmem:[%s1475_s1 + $0xe0] sm:$0xff] }
  0x10   :  { %863 = vmatprep.subr.bf16.mxu1 %v862_v43  ;;  %v43_v1 = vld [vmem:[%s1475_s1 + $0x50] sm:$0xff]  ;;  %v44_v2 = vld [vmem:[%s1475_s1 + $0x58] sm:$0xff]  ;;  %v870_v4 = vpack.c.bf16 %v92_v61, %v91_v60  ;;  %v62_v7 = vld [vmem:[%s1475_s1 + $0xe8] sm:$0xff] }
  0x11   :  { %833 = vmatpush3.bf16.msra.mxu0 %v832_v48  ;;  %v75_v3 = vld [vmem:[%s1475_s1 + $0x150] sm:$0xff]  ;;  %v76_v5 = vld [vmem:[%s1475_s1 + $0x158] sm:$0xff]  ;;  %v93_v8 = vld [vmem:[%s1475_s1 + $0x1e0] sm:$0xff]  ;;  %v840_v10 = vpack.c.bf16 %v44_v2, %v43_v1  ;;  %v842_v14 = vpack.c.bf16 %v62_v7, %v61_v6 }
  0x12   :  { %835 = vmatprep.subr.bf16.mxu0 %v834_v52  ;;  %v94_v9 = vld [vmem:[%s1475_s1 + $0x1e8] sm:$0xff]  ;;  %v45_v11 = vld [vmem:[%s1475_s1 + $0x60] sm:$0xff]  ;;  %v872_v13 = vpack.c.bf16 %v76_v5, %v75_v3  ;;  %v63_v19 = vld [vmem:[%s1475_s1 + $0xf0] sm:$0xff] }
  0x13   :  { %865 = vmatpush3.bf16.msra.mxu1 %v864_v51  ;;  %v22_v12 = vld [vmem:[%s1474_s0 + $0x8] sm:$0xff]  ;;  %v77_v16 = vld [vmem:[%s1475_s1 + $0x160] sm:$0xff]  ;;  %v874_v18 = vpack.c.bf16 %v94_v9, %v93_v8  ;;  %v64_v20 = vld [vmem:[%s1475_s1 + $0xf8] sm:$0xff] }
  0x14   :  { %867 = vmatprep.subr.bf16.mxu1 %v866_v56  ;;  %v46_v15 = vld [vmem:[%s1475_s1 + $0x68] sm:$0xff]  ;;  %200 = vmatprep.mubr.f32.mxu0 %v22_v12  ;;  %v24_v21 = vld [vmem:[%s1474_s0 + $0x18] sm:$0xff]  ;;  %v95_v22 = vld [vmem:[%s1475_s1 + $0x1f0] sm:$0xff]  ;;  %v846_v26 = vpack.c.bf16 %v64_v20, %v63_v19 }
  0x15   :  { %837 = vmatpush3.bf16.msra.mxu0 %v836_v62  ;;  %v78_v17 = vld [vmem:[%s1475_s1 + $0x168] sm:$0xff]  ;;  %v96_v23 = vld [vmem:[%s1475_s1 + $0x1f8] sm:$0xff]  ;;  %275 = vmatprep.mubr.f32.mxu1 %v24_v21  ;;  %v844_v24 = vpack.c.bf16 %v46_v15, %v45_v11  ;;  %v47_v27 = vld [vmem:[%s1475_s1 + $0x70] sm:$0xff] }
  0x16   :  { %839 = vmatprep.subr.bf16.mxu0 %v838_v0  ;;  %v876_v25 = vpack.c.bf16 %v78_v17, %v77_v16  ;;  %v48_v28 = vld [vmem:[%s1475_s1 + $0x78] sm:$0xff]  ;;  %v79_v29 = vld [vmem:[%s1475_s1 + $0x170] sm:$0xff]  ;;  %v878_v30 = vpack.c.bf16 %v96_v23, %v95_v22  ;;  %v113_v32 = vld [vmem:[%s1475_s1 + $0x280] sm:$0xff] }
  0x17   :  { %869 = vmatpush3.bf16.msra.mxu1 %v868_v63  ;;  %v80_v31 = vld [vmem:[%s1475_s1 + $0x178] sm:$0xff]  ;;  %v114_v33 = vld [vmem:[%s1475_s1 + $0x288] sm:$0xff]  ;;  %v848_v34 = vpack.c.bf16 %v48_v28, %v47_v27  ;;  %v97_v37 = vld [vmem:[%s1475_s1 + $0x200] sm:$0xff] }
  0x18   :  { %871 = vmatprep.subr.bf16.mxu1 %v870_v4  ;;  %v880_v35 = vpack.c.bf16 %v80_v31, %v79_v29  ;;  %v882_v36 = vpack.c.bf16 %v114_v33, %v113_v32  ;;  %v98_v38 = vld [vmem:[%s1475_s1 + $0x208] sm:$0xff]  ;;  %v115_v39 = vld [vmem:[%s1475_s1 + $0x290] sm:$0xff]  ;;  %v116_v40 = vld [vmem:[%s1475_s1 + $0x298] sm:$0xff] }
  0x19   :  { %841 = vmatpush3.bf16.msra.mxu0 %v840_v10  ;;  %v21_v41 = vld [vmem:[%s1474_s0] sm:$0xff]  ;;  %v884_v42 = vpack.c.bf16 %v98_v38, %v97_v37  ;;  %v23_v43 = vld [vmem:[%s1474_s0 + $0x10] sm:$0xff]  ;;  %v886_v44 = vpack.c.bf16 %v116_v40, %v115_v39  ;;  %v100_v46 = vld [vmem:[%s1475_s1 + $0x218] sm:$0xff] }
  0x1a   :  { %843 = vmatprep.subr.bf16.mxu0 %v842_v14  ;;  %v99_v45 = vld [vmem:[%s1475_s1 + $0x210] sm:$0xff]  ;;  %v117_v47 = vld [vmem:[%s1475_s1 + $0x2a0] sm:$0xff]  ;;  %v118_v48 = vld [vmem:[%s1475_s1 + $0x2a8] sm:$0xff] }
  0x1b   :  { %873 = vmatpush3.bf16.msra.mxu1 %v872_v13  ;;  %v28_v49 = vld [vmem:[%s1474_s0 + $0x38] sm:$0xff]  ;;  %v30_v50 = vld [vmem:[%s1474_s0 + $0x48] sm:$0xff]  ;;  %v888_v51 = vpack.c.bf16 %v100_v46, %v99_v45  ;;  %v27_v52 = vld [vmem:[%s1474_s0 + $0x30] sm:$0xff] }
  0x1c   :  { %875 = vmatprep.subr.bf16.mxu1 %v874_v18 }
  0x1d   :  { %845 = vmatpush3.bf16.msra.mxu0 %v844_v24 }
  0x1e   :  { %847 = vmatprep.subr.bf16.mxu0 %v846_v26 }
  0x1f   :  { %877 = vmatpush3.bf16.msra.mxu1 %v876_v25 }
  0x20   :  { %879 = vmatprep.subr.bf16.mxu1 %v878_v30 }
  0x21   :  { %849 = vmatpush3.bf16.msra.mxu0 %v848_v34 }
  0x22   :  { %883 = vmatprep.subr.bf16.mxu0 %v882_v36 }
  0x23   :  { %881 = vmatpush3.bf16.msra.mxu1 %v880_v35 }
  0x24   :  { %201 = vmatmul.mubr.f32.vlgmr.msra.gmra.mrb[0].mxu0 %v21_v41 }
  0x25   :  { %885 = vmatpush3.bf16.msra.mxu0 %v884_v42 }
  0x26   :  { %276 = vmatmul.mubr.f32.vlgmr.msra.gmra.mrb[0].mxu1 %v23_v43 }
  0x27   :  { %10 = vsyncpa [#allocation3], 0  ;;  %887 = vmatprep.subr.bf16.mxu0 %v886_v44  ;;  %v890_v53 = vpack.c.bf16 %v118_v48, %v117_v47  ;;  %v101_v54 = vld [vmem:[%s1475_s1 + $0x220] sm:$0xff]  ;;  %v102_v55 = vld [vmem:[%s1475_s1 + $0x228] sm:$0xff]  ;;  %205 = vmatprep.mubr.f32.mxu0 %v28_v49  ;;  %v978_v49 = vmov 0.0   ;;  %vm431_vm0 = vcmask 392192  }
  0x28   :  { %v29_v56 = vld [vmem:[%s1474_s0 + $0x40] sm:$0xff]  ;;  %v119_v57 = vld [vmem:[%s1475_s1 + $0x2b0] sm:$0xff]  ;;  %v120_v58 = vld [vmem:[%s1475_s1 + $0x2b8] sm:$0xff]  ;;  %280 = vmatprep.mubr.f32.mxu1 %v30_v50  ;;  %206 = vmatmul.mubr.f32.gmra.mrb[2].mxu0 %v27_v52  ;;  %v892_v60 = vpack.c.bf16 %v102_v55, %v101_v54 }
  0x29   :  { %v26_v59 = vld [vmem:[%s1474_s0 + $0x28] sm:$0xff]  ;;  %889 = vmatpush3.bf16.msra.mxu0 %v888_v51  ;;  %v894_v61 = vpack.c.bf16 %v120_v58, %v119_v57  ;;  %v103_v62 = vld [vmem:[%s1475_s1 + $0x230] sm:$0xff]  ;;  %v104_v63 = vld [vmem:[%s1475_s1 + $0x238] sm:$0xff] }
  0x2a   :  { %281 = vmatmul.mubr.f32.gmra.mrb[2].mxu1 %v29_v56  ;;  %891 = vmatprep.subr.bf16.mxu0 %v890_v53  ;;  %v121_v0 = vld [vmem:[%s1475_s1 + $0x2c0] sm:$0xff]  ;;  %v122_v1 = vld [vmem:[%s1475_s1 + $0x2c8] sm:$0xff]  ;;  %v896_v2 = vpack.c.bf16 %v104_v63, %v103_v62  ;;  %v123_v6 = vld [vmem:[%s1475_s1 + $0x2d0] sm:$0xff] }
  0x2b   :  { %350 = vmatprep.mubr.f32.mxu0 %v26_v59  ;;  %v898_v3 = vpack.c.bf16 %v122_v1, %v121_v0  ;;  %v105_v4 = vld [vmem:[%s1475_s1 + $0x240] sm:$0xff]  ;;  %v106_v5 = vld [vmem:[%s1475_s1 + $0x248] sm:$0xff]  ;;  %v124_v7 = vld [vmem:[%s1475_s1 + $0x2d8] sm:$0xff]  ;;  %502 = vmatprep.mubr.f32.mxu1 %v978_v49 }
  0x2c   :  { %v900_v8 = vpack.c.bf16 %v106_v5, %v105_v4  ;;  %v902_v9 = vpack.c.bf16 %v124_v7, %v123_v6  ;;  %v107_v10 = vld [vmem:[%s1475_s1 + $0x250] sm:$0xff]  ;;  %v108_v11 = vld [vmem:[%s1475_s1 + $0x258] sm:$0xff]  ;;  %v125_v12 = vld [vmem:[%s1475_s1 + $0x2e0] sm:$0xff] }
  0x2d   :  { %893 = vmatpush3.bf16.msra.mxu0 %v892_v60  ;;  %v126_v13 = vld [vmem:[%s1475_s1 + $0x2e8] sm:$0xff]  ;;  %v904_v14 = vpack.c.bf16 %v108_v11, %v107_v10  ;;  %v109_v16 = vld [vmem:[%s1475_s1 + $0x260] sm:$0xff]  ;;  %v127_v18 = vld [vmem:[%s1475_s1 + $0x2f0] sm:$0xff] }
  0x2e   :  { %895 = vmatprep.subr.bf16.mxu0 %v894_v61  ;;  %v906_v15 = vpack.c.bf16 %v126_v13, %v125_v12  ;;  %v110_v17 = vld [vmem:[%s1475_s1 + $0x268] sm:$0xff]  ;;  %v128_v19 = vld [vmem:[%s1475_s1 + $0x2f8] sm:$0xff]  ;;  %v111_v22 = vld [vmem:[%s1475_s1 + $0x270] sm:$0xff] }
  0x2f   :  { %v908_v20 = vpack.c.bf16 %v110_v17, %v109_v16  ;;  %v910_v21 = vpack.c.bf16 %v128_v19, %v127_v18  ;;  %v112_v23 = vld [vmem:[%s1475_s1 + $0x278] sm:$0xff]  ;;  %v25_v25 = vld [vmem:[%s1474_s0 + $0x20] sm:$0xff]  ;;  %v31_v27 = vld [vmem:[%s1474_s0 + $0x50] sm:$0xff] }
  0x30   :  { %v912_v24 = vpack.c.bf16 %v112_v23, %v111_v22  ;;  %v32_v26 = vld [vmem:[%s1474_s0 + $0x58] sm:$0xff]  ;;  %v364_v28 = vld [vmem:[%s1477_s3 + $0x8] sm:$0xff]  ;;  %v363_v31 = vld [vmem:[%s1477_s3] sm:$0xff] }
  0x31   :  { %897 = vmatpush3.bf16.msra.mxu0 %v896_v2  ;;  %v370_v29 = vld [vmem:[%s1477_s3 + $0x38] sm:$0xff]  ;;  %v369_v32 = vld [vmem:[%s1477_s3 + $0x30] sm:$0xff]  ;;  %v376_v34 = vld [vmem:[%s1477_s3 + $0x68] sm:$0xff] }
  0x32   :  { %899 = vmatprep.subr.bf16.mxu0 %v898_v3  ;;  %v914_v30 = vpack.c.bf16 %v370_v29, %v364_v28  ;;  %v916_v33 = vpack.c.bf16 %v369_v32, %v363_v31  ;;  %v382_v35 = vld [vmem:[%s1477_s3 + $0x98] sm:$0xff]  ;;  %v375_v37 = vld [vmem:[%s1477_s3 + $0x60] sm:$0xff]  ;;  %v381_v38 = vld [vmem:[%s1477_s3 + $0x90] sm:$0xff] }
  0x33   :  { %v918_v36 = vpack.c.bf16 %v382_v35, %v376_v34  ;;  %v920_v39 = vpack.c.bf16 %v381_v38, %v375_v37  ;;  %v388_v40 = vld [vmem:[%s1477_s3 + $0xc8] sm:$0xff]  ;;  %v394_v41 = vld [vmem:[%s1477_s3 + $0xf8] sm:$0xff]  ;;  %v387_v43 = vld [vmem:[%s1477_s3 + $0xc0] sm:$0xff] }
  0x34   :  { %915 = vmatprep.subr.bf16.mxu1 %v914_v30  ;;  %v922_v42 = vpack.c.bf16 %v394_v41, %v388_v40  ;;  %v393_v44 = vld [vmem:[%s1477_s3 + $0xf0] sm:$0xff]  ;;  %v366_v46 = vld [vmem:[%s1477_s3 + $0x18] sm:$0xff]  ;;  %v372_v47 = vld [vmem:[%s1477_s3 + $0x48] sm:$0xff] }
  0x35   :  { %901 = vmatpush3.bf16.msra.mxu0 %v900_v8  ;;  %917 = vmatpush1.bf16.msra.mxu1 %v916_v33  ;;  %v924_v45 = vpack.c.bf16 %v393_v44, %v387_v43  ;;  %v926_v48 = vpack.c.bf16 %v372_v47, %v366_v46  ;;  %v697_v51 = vld [vmem:[%s1476_s2] ss:$0 sm:$0xff]  ;;  %v365_v6 = vld [vmem:[%s1477_s3 + $0x10] sm:$0xff]  ;;  %v378_v8 = vld [vmem:[%s1477_s3 + $0x78] sm:$0xff]  ;;  %v401_v46 = vlaneseq }
  0x36   :  { %903 = vmatprep.subr.bf16.mxu0 %v902_v9  ;;  %919 = vmatprep.subr.bf16.mxu1 %v918_v36  ;;  %v371_v7 = vld [vmem:[%s1477_s3 + $0x40] sm:$0xff]  ;;  %v384_v9 = vld [vmem:[%s1477_s3 + $0xa8] sm:$0xff]  ;;  %v377_v17 = vld [vmem:[%s1477_s3 + $0x70] sm:$0xff] }
  0x37   :  { %v928_v13 = vpack.c.bf16 %v371_v7, %v365_v6  ;;  %v930_v16 = vpack.c.bf16 %v384_v9, %v378_v8  ;;  %v383_v18 = vld [vmem:[%s1477_s3 + $0xa0] sm:$0xff]  ;;  %v390_v19 = vld [vmem:[%s1477_s3 + $0xd8] sm:$0xff]  ;;  %v373_v32 = vld [vmem:[%s1477_s3 + $0x50] sm:$0xff]  ;;  %v402_v47 = vshrl.u32 %v401_v46, 7 }
  0x38   :  { %v932_v22 = vpack.c.bf16 %v383_v18, %v377_v17  ;;  %v374_v28 = vld [vmem:[%s1477_s3 + $0x58] sm:$0xff]  ;;  %v367_v31 = vld [vmem:[%s1477_s3 + $0x20] sm:$0xff]  ;;  %v380_v33 = vld [vmem:[%s1477_s3 + $0x88] sm:$0xff] }
  0x39   :  { %905 = vmatpush3.bf16.msra.mxu0 %v904_v14  ;;  %921 = vmatpush1.bf16.msra.mxu1 %v920_v39  ;;  %v386_v34 = vld [vmem:[%s1477_s3 + $0xb8] sm:$0xff]  ;;  %v940_v35 = vpack.c.bf16 %v373_v32, %v367_v31  ;;  %v379_v37 = vld [vmem:[%s1477_s3 + $0x80] sm:$0xff]  ;;  %v385_v38 = vld [vmem:[%s1477_s3 + $0xb0] sm:$0xff]  ;;  %v419_v8 = vsub.s32 4, %v402_v47 }
  0x3a   :  { %907 = vmatprep.subr.bf16.mxu0 %v906_v15  ;;  %923 = vmatprep.subr.bf16.mxu1 %v922_v42  ;;  %v942_v36 = vpack.c.bf16 %v386_v34, %v380_v33  ;;  %v392_v39 = vld [vmem:[%s1477_s3 + $0xe8] sm:$0xff]  ;;  %v398_v40 = vld [vmem:[%s1477_s3 + $0x118] sm:$0xff]  ;;  %v944_v41 = vpack.c.bf16 %v385_v38, %v379_v37  ;;  %v391_v43 = vld [vmem:[%s1477_s3 + $0xe0] sm:$0xff] }
  0x3b   :  { %v946_v42 = vpack.c.bf16 %v398_v40, %v392_v39  ;;  %v397_v44 = vld [vmem:[%s1477_s3 + $0x110] sm:$0xff] }
  0x3d   :  { %909 = vmatpush3.bf16.msra.mxu0 %v908_v20  ;;  %925 = vmatpush1.bf16.msra.mxu1 %v924_v45  ;;  %v396_v20 = vld [vmem:[%s1477_s3 + $0x108] sm:$0xff]  ;;  %v948_v45 = vpack.c.bf16 %v397_v44, %v391_v43 }
  0x3e   :  { %911 = vmatprep.subr.bf16.mxu0 %v910_v21  ;;  %927 = vmatprep.subr.bf16.mxu1 %v926_v48  ;;  %v403_v48 = vsub.s32 0, %v402_v47 }
  0x41   :  { %913 = vmatpush3.bf16.msra.mxu0 %v912_v24  ;;  %v934_v24 = vpack.c.bf16 %v396_v20, %v390_v19 }
  0x44   :  { %351 = vmatmul.mubr.f32.vlgmr.msra.gmra.mrb[4].mxu0 %v25_v25  ;;  %v389_v25 = vld [vmem:[%s1477_s3 + $0xd0] sm:$0xff] }
  0x45   :  { %355 = vmatprep.mubr.f32.mxu0 %v32_v26  ;;  %v395_v26 = vld [vmem:[%s1477_s3 + $0x100] sm:$0xff] }
  0x46   :  { %v936_v29 = vpack.c.bf16 %v395_v26, %v389_v25 }
  0x48   :  { %356 = vmatmul.mubr.f32.gmra.mrb[6].mxu0 %v31_v27  ;;  %v368_v27 = vld [vmem:[%s1477_s3 + $0x28] sm:$0xff]  ;;  %s979_s3 = smov [#allocation2]  }
  0x49   :  { %v938_v30 = vpack.c.bf16 %v374_v28, %v368_v27 }
  0xf7   :  { %v736_v50 = vpop.f32.mrb[0].mxu0 }
  0xf8   :  { %v737_v52 = vpop.f32.mrb[1].mxu0 }
  0xf9   :  { %v774_v53 = vpop.f32.mrb[0].mxu1  ;;  %v738_v54 = vadd.f32 %v737_v52, %v736_v50  ;;  %v399_v50 = vld [vmem:[%s1478_s4] sm:$0x3f]  ;;  %s686_s4 = sshll.u32 %s979_s3, 4  ;;  %s687_s4 = int_to_ptr.vmem [resolvable:$true] %s686_s4 }
  0xfa   :  { %v775_v55 = vpop.f32.mrb[1].mxu1  ;;  %v404_v52 = vrot.slane %v399_v50, %v403_v48  ;;  %s954_s27 = scalar_lea.vmem %s687_s4, 1536  ;;  %p959_p1 = scmp.lt.s32.totalorder %s687_s4, %s687_s4 }
  0xfb   :  { %v776_v56 = vadd.f32 %v775_v55, %v774_v53  ;;  %v203_v57 = vadd.f32 %v738_v54, %v697_v51  ;;  %v739_v58 = vpop.f32.mrb[2].mxu0  ;;  %p955_p0 = scmp.ne.s32.totalorder %s687_s4, %s954_s27  ;;  %p960_p2 = scmp.lt.s32.totalorder %s954_s27, %s954_s27 }
  0xfc   :  { %v740_v59 = vpop.f32.mrb[3].mxu0 }
  0xfd   :  { %v777_v60 = vpop.f32.mrb[2].mxu1  ;;  %v278_v61 = vadd.f32 %v776_v56, %v203_v57  ;;  %v741_v62 = vadd.f32 %v740_v59, %v739_v58  ;;  %p961_p3 = por %p960_p2, %p959_p1 }
  0xfe   :  { %v778_v63 = vpop.f32.mrb[3].mxu1 }
  0xff   :  { %v779_v0 = vadd.f32 %v778_v63, %v777_v60  ;;  %v208_v1 = vadd.f32 %v741_v62, %v697_v51  ;;  %v407_v51 = vsub.s32 1, %v402_v47  ;;  %v411_v60 = vsub.s32 2, %v402_v47  ;;  %p962_p4 = pnand %p961_p3, %p955_p0 }
 0x100   :  { %v415_v62 = vsub.s32 3, %v402_v47 }
 0x101   :  { %v283_v2 = vadd.f32 %v779_v0, %v208_v1  ;;  %v408_v53 = vrot.slane %v399_v50, %v407_v51  ;;  %v412_v63 = vrot.slane %v399_v50, %v411_v60 }
 0x102   :  { %v416_v0 = vrot.slane %v399_v50, %v415_v62 }
 0x117   :  { %v812_v3 = vpop.f32.mrb[4].mxu0 }
 0x118   :  { %v813_v4 = vpop.f32.mrb[5].mxu0 }
 0x119   :  { %v814_v5 = vadd.f32 %v813_v4, %v812_v3 }
 0x11b   :  { %v353_v10 = vadd.f32 %v814_v5, %v278_v61  ;;  %v815_v11 = vpop.f32.mrb[6].mxu0 }
 0x11c   :  { %v816_v12 = vpop.f32.mrb[7].mxu0 }
 0x11d   :  { %v361_v14 = vmax.f32 %v353_v10, 0.0  ;;  %v817_v15 = vadd.f32 %v816_v12, %v815_v11  ;;  %v423_v10 = vsub.s32 5, %v402_v47  ;;  %v420_v11 = vrot.slane %v399_v50, %v419_v8 }
 0x11f   :  { %v358_v21 = vadd.f32 %v817_v15, %v283_v2  ;;  %698 = vmatmul.mubr.msk.f32.vlgmr.msra.gmra.mrb[4].mxu1 %vm431_vm0, %v361_v14  ;;  %v424_v12 = vrot.slane %v399_v50, %v423_v10 }
 0x120   :  { %929 = vmatpush1.bf16.msra.mxu1 %v928_v13  ;;  %508 = vmatprep.mubr.f32.mxu1 %v978_v49 }
 0x121   :  { %v362_v23 = vmax.f32 %v358_v21, 0.0  ;;  %931 = vmatprep.subr.bf16.mxu1 %v930_v16 }
 0x123   :  { %699 = vmatmul.mubr.msk.f32.gmra.mrb[6].mxu1 %vm431_vm0, %v362_v23 }
 0x124   :  { %933 = vmatpush1.bf16.msra.mxu1 %v932_v22  ;;  %579 = vmatprep.mubr.f32.mxu1 %v978_v49 }
 0x125   :  { %935 = vmatprep.subr.bf16.mxu1 %v934_v24 }
 0x128   :  { %937 = vmatpush1.bf16.msra.mxu1 %v936_v29 }
 0x129   :  { %939 = vmatprep.subr.bf16.mxu1 %v938_v30 }
 0x12b   :  { %700 = vmatmul.mubr.msk.f32.vlgmr.msra.gmra.mrb[8].mxu1 %vm431_vm0, %v361_v14 }
 0x12c   :  { %941 = vmatpush1.bf16.msra.mxu1 %v940_v35  ;;  %585 = vmatprep.mubr.f32.mxu1 %v978_v49 }
 0x12d   :  { %943 = vmatprep.subr.bf16.mxu1 %v942_v36 }
 0x12f   :  { %701 = vmatmul.mubr.msk.f32.gmra.mrb[10].mxu1 %vm431_vm0, %v362_v23 }
 0x130   :  { %945 = vmatpush1.bf16.msra.mxu1 %v944_v41  ;;  %656 = vmatprep.mubr.f32.mxu1 %v978_v49 }
 0x131   :  { %947 = vmatprep.subr.bf16.mxu1 %v946_v42 }
 0x134   :  { %949 = vmatpush1.bf16.msra.mxu1 %v948_v45 }
 0x137   :  { %702 = vmatmul.mubr.msk.f32.vlgmr.msra.gmra.mrb[12].mxu1 %vm431_vm0, %v361_v14 }
 0x138   :  { %662 = vmatprep.mubr.f32.mxu1 %v978_v49 }
 0x13b   :  { %703 = vmatmul.mubr.msk.f32.gmra.mrb[14].mxu1 %vm431_vm0, %v362_v23 }
 0x1f2   :  { %v504_v54 = vpop.f32.mrb[4].mxu1 }
 0x1f3   :  { %v505_v55 = vadd.f32 %v504_v54, %v404_v52  ;;  %v506_v56 = vpop.f32.mrb[5].mxu1 }
 0x1f4   :  { %v507_v57 = vadd.f32 %v506_v56, %v408_v53 }
 0x1f5   :  { %669 = vst [vmem:[#allocation2] sm:$0xff] %v505_v55 }
 0x1f6   :  { %670 = vst [vmem:[#allocation2 + $0x8] sm:$0xff] %v507_v57  ;;  %v510_v58 = vpop.f32.mrb[6].mxu1 }
 0x1f7   :  { %v511_v49 = vadd.f32 %v510_v58, %v404_v52  ;;  %v512_v59 = vpop.f32.mrb[7].mxu1 }
 0x1f8   :  { %v513_v61 = vadd.f32 %v512_v59, %v408_v53 }
 0x1f9   :  { %675 = vst [vmem:[#allocation2 + $0x30] sm:$0xff] %v511_v49 }
 0x1fa   :  { %676 = vst [vmem:[#allocation2 + $0x38] sm:$0xff] %v513_v61 }
 0x1fe   :  { %v581_v1 = vpop.f32.mrb[8].mxu1 }
 0x1ff   :  { %v582_v2 = vadd.f32 %v581_v1, %v412_v63  ;;  %v583_v3 = vpop.f32.mrb[9].mxu1 }
 0x200   :  { %v584_v4 = vadd.f32 %v583_v3, %v416_v0 }
 0x201   :  { %671 = vst [vmem:[#allocation2 + $0x10] sm:$0xff] %v582_v2 }
 0x202   :  { %672 = vst [vmem:[#allocation2 + $0x18] sm:$0xff] %v584_v4  ;;  %v587_v5 = vpop.f32.mrb[10].mxu1 }
 0x203   :  { %v588_v6 = vadd.f32 %v587_v5, %v412_v63  ;;  %v589_v7 = vpop.f32.mrb[11].mxu1 }
 0x204   :  { %v590_v9 = vadd.f32 %v589_v7, %v416_v0 }
 0x205   :  { %677 = vst [vmem:[#allocation2 + $0x40] sm:$0xff] %v588_v6 }
 0x206   :  { %678 = vst [vmem:[#allocation2 + $0x48] sm:$0xff] %v590_v9 }
 0x20a   :  { %v658_v13 = vpop.f32.mrb[12].mxu1 }
 0x20b   :  { %v659_v14 = vadd.f32 %v658_v13, %v420_v11  ;;  %v660_v15 = vpop.f32.mrb[13].mxu1 }
 0x20c   :  { %v661_v16 = vadd.f32 %v660_v15, %v424_v12 }
 0x20d   :  { %673 = vst [vmem:[#allocation2 + $0x20] sm:$0xff] %v659_v14 }
 0x20e   :  { %674 = vst [vmem:[#allocation2 + $0x28] sm:$0xff] %v661_v16  ;;  %v664_v17 = vpop.f32.mrb[14].mxu1 }
 0x20f   :  { %v665_v18 = vadd.f32 %v664_v17, %v420_v11  ;;  %v666_v19 = vpop.f32.mrb[15].mxu1 }
 0x210   :  { %v667_v20 = vadd.f32 %v666_v19, %v424_v12 }
 0x211   :  { %679 = vst [vmem:[#allocation2 + $0x50] sm:$0xff] %v665_v18 }
 0x212   :  { %680 = vst [vmem:[#allocation2 + $0x58] sm:$0xff] %v667_v20 }
 0x213   :  { %965 = shalt.err (!%p962_p4)
}
 0x214   :  { %s966_s30 = scalar_lea.hbm %s1479_s5, 1536 }
 0x215   :  { %p967_p5 = scmp.ne.s32.totalorder %s1479_s5, %s966_s30  ;;  %p970_p6 = scmp.lt.u32.totalorder %s966_s30, %s1479_s5 }
 0x217   :  { %p972_p7 = pnand %p970_p6, %p967_p5 }
 0x219   :  { %975 = shalt.err (!%p972_p7)
}
 0x21a   :  { %s980_s9 = smov 768   ;;  %s981_s10 = smov 48  }
 0x21b   :  { %692 = dma.vmem_to_hbm [thread:$0]  %s687_s4, 1536, %s1479_s5, [#allocation3], %s980_s9, %s980_s9, %s981_s10  }
 0x21c   :  { %976 = dma.done.wait [#allocation3], 1536  }
 0x21d   :  { %977 = vsyncadd [#allocation3], 4294965760 }
 0x21e   :  { %696 = vsyncpa [#allocation3], 1 }

</bundles_post_ra>
